<compile_context>
chip_gen: v7x
topology: tpu7x:2x2x1
jax: 0.10.0
libtpu: 0.0.40
codegen_flags: <defaults>
</compile_context>

<pallas_src>
import functools
import math

import jax
import jax.numpy as jnp
from jax.experimental import pallas as pl
from jax.experimental.pallas import tpu as pltpu


def _mha_kernel(q_ref, k_ref, v_ref, wq_ref, wk_ref, wv_ref, fcw_ref, fcb_ref,
                pad_ref, sub_ref, out_ref, *, num_heads):
    # Grid: (batch, q_tile).  One step == one batch element x one q tile.
    H = num_heads
    qb = q_ref[0]          # (tq, d_model)
    kb = k_ref[0]          # (len_kv, d_model)
    vb = v_ref[0]          # (len_kv, d_model)

    # Broadcast activations over the head axis (leading dim, cheap) so every
    # stage is a single head-batched matmul — no per-head loop, no concat.
    qb_h = jnp.broadcast_to(qb[None], (H,) + qb.shape)   # (H, tq, d_model)
    kb_h = jnp.broadcast_to(kb[None], (H,) + kb.shape)   # (H, len_kv, d_model)
    vb_h = jnp.broadcast_to(vb[None], (H,) + vb.shape)   # (H, len_kv, d_model)

    # Projections in x @ W layout (weights pre-arranged in the wrapper;
    # 1/sqrt(dvph) already folded into wq).
    qh = jnp.einsum('hqm,hmd->hqd', qb_h, wq_ref[...],
                    preferred_element_type=jnp.float32)   # (H, tq, dph)
    kh = jnp.einsum('hkm,hmd->hkd', kb_h, wk_ref[...],
                    preferred_element_type=jnp.float32)   # (H, len_kv, dph)
    vh = jnp.einsum('hkm,hmd->hkd', vb_h, wv_ref[...],
                    preferred_element_type=jnp.float32)   # (H, len_kv, dvph)

    # Scores for all heads at once.
    s = jnp.einsum('hqd,hkd->hqk', qh, kh,
                   preferred_element_type=jnp.float32)    # (H, tq, len_kv)

    # Build the boolean mask on-chip from the small resident integer masks.
    b = pl.program_id(0)
    pad = pad_ref[pl.ds(b, 1), :] != 0        # (1, len_kv)
    sub = sub_ref[...] != 0                   # (tq, len_kv)
    mask = jnp.logical_or(pad, sub)           # (tq, len_kv)
    s = jnp.where(mask[None, :, :], -1e30, s)

    # Softmax over keys (f32).
    m = jnp.max(s, axis=-1, keepdims=True)
    e = jnp.exp(s - m)
    denom = jnp.sum(e, axis=-1, keepdims=True)
    p = e * pl.reciprocal(denom)   # exact; flip to approx=True (EUP) if tolerable

    # Context and final Linear, still head-batched; heads are reduced by the
    # sum over the leading axis (equivalent to concat + fc since fc weight is
    # partitioned per head in the wrapper).
    ctx = jnp.einsum('hqk,hkd->hqd', p, vh,
                     preferred_element_type=jnp.float32)      # (H, tq, dvph)
    outh = jnp.einsum('hqd,hdm->hqm', ctx, fcw_ref[...],
                      preferred_element_type=jnp.float32)     # (H, tq, d_model)
    out = jnp.sum(outh, axis=0) + fcb_ref[...]                # (tq, d_model)
    out_ref[0] = out.astype(out_ref.dtype)


def multihead_attention(q, k, v, w_q, w_k, w_v, fc_w, fc_b,
                        padding_mask=None, subsequent_mask=None, *,
                        num_heads, block_q=128):
    """q,k,v: (len, batch, d_model) float32 -> (len_q, batch, d_model)."""
    len_q, batch, d_model = q.shape
    len_kv = k.shape[0]
    dim_qk = w_q.shape[0]
    dim_v = w_v.shape[0]
    dph = dim_qk // num_heads
    dvph = dim_v // num_heads

    # q-tile size: second parallel grid axis (keeps both v7x TCs busy when
    # batch is small).  Falls back to the full length to keep blocks legal.
    if len_q > block_q and len_q % block_q == 0:
        tq = block_q
    else:
        tq = len_q
    n_q_blocks = len_q // tq

    # Pre-arrange weights once (outside the kernel) in x @ W layout split per
    # head; fold the score scale into the Q projection weight.
    inv_scale = 1.0 / math.sqrt(dvph)   # PyTorch scales by sqrt(dim_v_per_head)
    wq3 = (w_q * inv_scale).reshape(num_heads, dph, d_model).transpose(0, 2, 1)
    wk3 = w_k.reshape(num_heads, dph, d_model).transpose(0, 2, 1)
    wv3 = w_v.reshape(num_heads, dvph, d_model).transpose(0, 2, 1)
    fcw3 = fc_w.T.reshape(num_heads, dvph, d_model)   # per-head rows of fc_w.T
    fcb2 = fc_b.reshape(1, d_model)

    # Small integer masks; the (batch, len_q, len_kv) f32 additive mask is
    # never materialized.
    if padding_mask is None:
        pad_i32 = jnp.zeros((batch, len_kv), jnp.int32)
    else:
        pad_i32 = padding_mask.astype(jnp.int32)
    if subsequent_mask is None:
        sub_i32 = jnp.zeros((len_q, len_kv), jnp.int32)
    else:
        sub_i32 = subsequent_mask.astype(jnp.int32)

    # Batch-major activations so per-batch blocks have full last-two dims.
    # TODO(synk): index the original (len, batch, d_model) layout directly via
    # BlockSpec (sub-8 second-minor blocks) to save two HBM passes each way.
    qb = jnp.transpose(q, (1, 0, 2))   # (batch, len_q, d_model)
    kb = jnp.transpose(k, (1, 0, 2))   # (batch, len_kv, d_model)
    vb = jnp.transpose(v, (1, 0, 2))   # (batch, len_kv, d_model)

    kernel = functools.partial(_mha_kernel, num_heads=num_heads)

    out = pl.pallas_call(
        kernel,
        out_shape=jax.ShapeDtypeStruct((batch, len_q, d_model), jnp.float32),
        grid=(batch, n_q_blocks),
        in_specs=[
            pl.BlockSpec((1, tq, d_model), lambda b, i: (b, i, 0)),
            pl.BlockSpec((1, len_kv, d_model), lambda b, i: (b, 0, 0)),
            pl.BlockSpec((1, len_kv, d_model), lambda b, i: (b, 0, 0)),
            # Weights / bias / masks: constant index maps -> DMA'd once, resident.
            pl.BlockSpec((num_heads, d_model, dph), lambda b, i: (0, 0, 0)),
            pl.BlockSpec((num_heads, d_model, dph), lambda b, i: (0, 0, 0)),
            pl.BlockSpec((num_heads, d_model, dvph), lambda b, i: (0, 0, 0)),
            pl.BlockSpec((num_heads, dvph, d_model), lambda b, i: (0, 0, 0)),
            pl.BlockSpec((1, d_model), lambda b, i: (0, 0)),
            pl.BlockSpec((batch, len_kv), lambda b, i: (0, 0)),
            pl.BlockSpec((tq, len_kv), lambda b, i: (i, 0)),
        ],
        out_specs=pl.BlockSpec((1, tq, d_model), lambda b, i: (b, i, 0)),
        compiler_params=pltpu.CompilerParams(
            dimension_semantics=("parallel", "parallel")),
    )(qb, kb, vb, wq3, wk3, wv3, fcw3, fcb2, pad_i32, sub_i32)

    return jnp.transpose(out, (1, 0, 2))   # back to (len_q, batch, d_model)


def _reference(q, k, v, w_q, w_k, w_v, fc_w, fc_b, padding_mask, subsequent_mask, num_heads):
    """Pure-JAX reference mirroring the PyTorch forward."""
    len_q, batch, d_model = q.shape
    len_kv = k.shape[0]
    dim_qk = w_q.shape[0]
    dim_v = w_v.shape[0]
    dph = dim_qk // num_heads
    dvph = dim_v // num_heads

    qp = q @ w_q.T
    kp = k @ w_k.T
    vp = v @ w_v.T
    qh = jnp.transpose(qp.reshape(len_q, batch * num_heads, dph), (1, 0, 2))
    kh = jnp.transpose(kp.reshape(len_kv, batch * num_heads, dph), (1, 0, 2))
    vh = jnp.transpose(vp.reshape(len_kv, batch * num_heads, dvph), (1, 0, 2))
    scores = jnp.einsum('bqd,bkd->bqk', qh, kh) / math.sqrt(dvph)

    mask = jnp.zeros((batch, len_q, len_kv), dtype=bool)
    if padding_mask is not None:
        mask = mask | padding_mask[:, None, :]
    if subsequent_mask is not None:
        mask = mask | subsequent_mask[None, :, :]
    mask4 = jnp.repeat(mask[:, None], num_heads, axis=1).reshape(batch * num_heads, len_q, len_kv)
    scores = jnp.where(mask4, -jnp.inf, scores)
    p = jax.nn.softmax(scores, axis=-1)
    ctx = jnp.einsum('bqk,bkd->bqd', p, vh)
    ctx = jnp.transpose(ctx, (1, 0, 2)).reshape(len_q, batch, dim_v)
    return ctx @ fc_w.T + fc_b


if __name__ == "__main__":
    # Module config: d_model == dim_qk == dim_v (qkv_same_d_model=True branch).
    d_model = 32
    num_heads = 4
    dim_qk = 32
    dim_v = 32
    len_q = 8
    len_kv = 8
    batch = 2

    key = jax.random.PRNGKey(0)
    ks = jax.random.split(key, 8)

    # self.w has shape (3*d_model, d_model); slice into q/k/v projections.
    w = jax.random.normal(ks[0], (3 * d_model, d_model), jnp.float32) * 0.1
    w_q = w[0:dim_qk, :]
    w_k = w[dim_qk:2 * dim_qk, :]
    w_v = w[2 * dim_qk:, :]
    fc_w = jax.random.normal(ks[1], (d_model, dim_v), jnp.float32) * 0.1
    fc_b = jax.random.normal(ks[2], (d_model,), jnp.float32) * 0.1

    q = jax.random.normal(ks[3], (len_q, batch, d_model), jnp.float32)
    k = jax.random.normal(ks[4], (len_kv, batch, d_model), jnp.float32)
    v = jax.random.normal(ks[5], (len_kv, batch, d_model), jnp.float32)

    # padding_mask: (batch, len_kv) bool; True = masked.  Keep first positions valid.
    padding_mask = jnp.zeros((batch, len_kv), dtype=bool).at[:, -2:].set(True)
    # subsequent_mask: (len_q, len_q) causal upper-triangular bool.
    subsequent_mask = jnp.triu(jnp.ones((len_q, len_q), dtype=bool), k=1)

    out = multihead_attention(q, k, v, w_q, w_k, w_v, fc_w, fc_b,
                              padding_mask, subsequent_mask, num_heads=num_heads)
    out = jax.block_until_ready(out)

    ref = _reference(q, k, v, w_q, w_k, w_v, fc_w, fc_b,
                     padding_mask, subsequent_mask, num_heads)
    assert out.shape == (len_q, batch, d_model)
    assert jnp.allclose(out, ref, atol=1e-4, rtol=1e-4), "mismatch vs reference"

    print("KERNEL_OK")
</pallas_src>

<mosaic_0001>
module attributes {stable_mosaic.version = 11 : i64} {
  func.func @_mha_kernel(%arg0: i32, %arg1: i32, %arg2: memref<1x8x32xf32, #tpu.memory_space<vmem>>, %arg3: memref<1x8x32xf32, #tpu.memory_space<vmem>>, %arg4: memref<1x8x32xf32, #tpu.memory_space<vmem>>, %arg5: memref<4x32x8xf32, #tpu.memory_space<vmem>>, %arg6: memref<4x32x8xf32, #tpu.memory_space<vmem>>, %arg7: memref<4x32x8xf32, #tpu.memory_space<vmem>>, %arg8: memref<4x8x32xf32, #tpu.memory_space<vmem>>, %arg9: memref<1x32xf32, #tpu.memory_space<vmem>>, %arg10: memref<2x8xi32, #tpu.memory_space<vmem>>, %arg11: memref<8x8xi32, #tpu.memory_space<vmem>>, %arg12: memref<1x8x32xf32, #tpu.memory_space<vmem>>) attributes {dimension_semantics = [#tpu.dimension_semantics<parallel>, #tpu.dimension_semantics<parallel>], iteration_bounds = array<i64: 2, 1>, scalar_prefetch = 0 : i64, scratch_operands = 0 : i64, tpu.core_type = #tpu.core_type<tc>, window_params = [{transform_indices = @transform_0, window_bounds = array<i64: 1, 8, 32>}, {transform_indices = @transform_1, window_bounds = array<i64: 1, 8, 32>}, {transform_indices = @transform_2, window_bounds = array<i64: 1, 8, 32>}, {pipeline_mode = #tpu.pipeline_mode<synchronous>, transform_indices = @transform_3, window_bounds = array<i64: 4, 32, 8>}, {pipeline_mode = #tpu.pipeline_mode<synchronous>, transform_indices = @transform_4, window_bounds = array<i64: 4, 32, 8>}, {pipeline_mode = #tpu.pipeline_mode<synchronous>, transform_indices = @transform_5, window_bounds = array<i64: 4, 32, 8>}, {pipeline_mode = #tpu.pipeline_mode<synchronous>, transform_indices = @transform_6, window_bounds = array<i64: 4, 8, 32>}, {pipeline_mode = #tpu.pipeline_mode<synchronous>, transform_indices = @transform_7, window_bounds = array<i64: 1, 32>}, {pipeline_mode = #tpu.pipeline_mode<synchronous>, transform_indices = @transform_8, window_bounds = array<i64: 2, 8>}, {transform_indices = @transform_9, window_bounds = array<i64: 8, 8>}, {transform_indices = @transform_10, window_bounds = array<i64: 1, 8, 32>}]} {
    %c0 = arith.constant 0 : index
    %c0_0 = arith.constant 0 : index
    %c0_1 = arith.constant 0 : index
    %0 = vector.load %arg2[%c0, %c0_0, %c0_1] : memref<1x8x32xf32, #tpu.memory_space<vmem>>, vector<1x8x32xf32>
    %1 = vector.shape_cast %0 : vector<1x8x32xf32> to vector<8x32xf32>
    %c0_2 = arith.constant 0 : index
    %c0_3 = arith.constant 0 : index
    %c0_4 = arith.constant 0 : index
    %2 = vector.load %arg3[%c0_2, %c0_3, %c0_4] : memref<1x8x32xf32, #tpu.memory_space<vmem>>, vector<1x8x32xf32>
    %3 = vector.shape_cast %2 : vector<1x8x32xf32> to vector<8x32xf32>
    %c0_5 = arith.constant 0 : index
    %c0_6 = arith.constant 0 : index
    %c0_7 = arith.constant 0 : index
    %4 = vector.load %arg4[%c0_5, %c0_6, %c0_7] : memref<1x8x32xf32, #tpu.memory_space<vmem>>, vector<1x8x32xf32>
    %5 = vector.shape_cast %4 : vector<1x8x32xf32> to vector<8x32xf32>
    %6 = vector.shape_cast %1 : vector<8x32xf32> to vector<1x8x32xf32>
    %7 = vector.shape_cast %6 : vector<1x8x32xf32> to vector<1x8x32xf32>
    %8 = vector.broadcast %7 : vector<1x8x32xf32> to vector<4x8x32xf32>
    %9 = vector.shape_cast %3 : vector<8x32xf32> to vector<1x8x32xf32>
    %10 = vector.shape_cast %9 : vector<1x8x32xf32> to vector<1x8x32xf32>
    %11 = vector.broadcast %10 : vector<1x8x32xf32> to vector<4x8x32xf32>
    %12 = vector.shape_cast %5 : vector<8x32xf32> to vector<1x8x32xf32>
    %13 = vector.shape_cast %12 : vector<1x8x32xf32> to vector<1x8x32xf32>
    %14 = vector.broadcast %13 : vector<1x8x32xf32> to vector<4x8x32xf32>
    %c0_8 = arith.constant 0 : index
    %c0_9 = arith.constant 0 : index
    %c0_10 = arith.constant 0 : index
    %15 = vector.load %arg5[%c0_8, %c0_9, %c0_10] : memref<4x32x8xf32, #tpu.memory_space<vmem>>, vector<4x32x8xf32>
    "tpu.trace_start"() <{level = 10 : i32, message = "hqm,hmd->hqd"}> : () -> ()
    %cst = arith.constant dense<0.000000e+00> : vector<4x8x8xf32>
    %16 = tpu.matmul %8, %15, %cst {dimension_numbers = #tpu.dot_dimension_numbers<[2], [1], [1], [2], [0, 0, 0, 1, 1, 2], [0], [0]>} : vector<4x8x32xf32>, vector<4x32x8xf32>, vector<4x8x8xf32> -> vector<4x8x8xf32>
    "tpu.trace_stop"() : () -> ()
    %c0_11 = arith.constant 0 : index
    %c0_12 = arith.constant 0 : index
    %c0_13 = arith.constant 0 : index
    %17 = vector.load %arg6[%c0_11, %c0_12, %c0_13] : memref<4x32x8xf32, #tpu.memory_space<vmem>>, vector<4x32x8xf32>
    "tpu.trace_start"() <{level = 10 : i32, message = "hkm,hmd->hkd"}> : () -> ()
    %cst_14 = arith.constant dense<0.000000e+00> : vector<4x8x8xf32>
    %18 = tpu.matmul %11, %17, %cst_14 {dimension_numbers = #tpu.dot_dimension_numbers<[2], [1], [1], [2], [0, 0, 0, 1, 1, 2], [0], [0]>} : vector<4x8x32xf32>, vector<4x32x8xf32>, vector<4x8x8xf32> -> vector<4x8x8xf32>
    "tpu.trace_stop"() : () -> ()
    %c0_15 = arith.constant 0 : index
    %c0_16 = arith.constant 0 : index
    %c0_17 = arith.constant 0 : index
    %19 = vector.load %arg7[%c0_15, %c0_16, %c0_17] : memref<4x32x8xf32, #tpu.memory_space<vmem>>, vector<4x32x8xf32>
    "tpu.trace_start"() <{level = 10 : i32, message = "hkm,hmd->hkd"}> : () -> ()
    %cst_18 = arith.constant dense<0.000000e+00> : vector<4x8x8xf32>
    %20 = tpu.matmul %14, %19, %cst_18 {dimension_numbers = #tpu.dot_dimension_numbers<[2], [1], [1], [2], [0, 0, 0, 1, 1, 2], [0], [0]>} : vector<4x8x32xf32>, vector<4x32x8xf32>, vector<4x8x8xf32> -> vector<4x8x8xf32>
    "tpu.trace_stop"() : () -> ()
    "tpu.trace_start"() <{level = 10 : i32, message = "hqd,hkd->hqk"}> : () -> ()
    %cst_19 = arith.constant dense<0.000000e+00> : vector<4x8x8xf32>
    %21 = tpu.matmul %16, %18, %cst_19 {dimension_numbers = #tpu.dot_dimension_numbers<[2], [2], [1], [1], [0, 0, 0, 1, 1, 1], [0], [0]>} : vector<4x8x8xf32>, vector<4x8x8xf32>, vector<4x8x8xf32> -> vector<4x8x8xf32>
    "tpu.trace_stop"() : () -> ()
    %22 = arith.index_cast %arg0 : i32 to index
    %c0_20 = arith.constant 0 : index
    %23 = vector.load %arg10[%22, %c0_20] : memref<2x8xi32, #tpu.memory_space<vmem>>, vector<1x8xi32>
    %c0_i32 = arith.constant 0 : i32
    %24 = vector.broadcast %c0_i32 : i32 to vector<1x8xi32>
    %25 = arith.cmpi ne, %23, %24 : vector<1x8xi32>
    %c0_21 = arith.constant 0 : index
    %c0_22 = arith.constant 0 : index
    %26 = vector.load %arg11[%c0_21, %c0_22] : memref<8x8xi32, #tpu.memory_space<vmem>>, vector<8x8xi32>
    %c0_i32_23 = arith.constant 0 : i32
    %27 = vector.broadcast %c0_i32_23 : i32 to vector<8x8xi32>
    %28 = arith.cmpi ne, %26, %27 : vector<8x8xi32>
    %29 = vector.broadcast %25 : vector<1x8xi1> to vector<8x8xi1>
    %30 = arith.ori %29, %28 : vector<8x8xi1>
    %31 = vector.shape_cast %30 : vector<8x8xi1> to vector<1x8x8xi1>
    %cst_24 = arith.constant -1.000000e+30 : f32
    %32 = vector.shape_cast %31 : vector<1x8x8xi1> to vector<1x8x8xi1>
    %33 = vector.broadcast %32 : vector<1x8x8xi1> to vector<4x8x8xi1>
    %34 = vector.broadcast %cst_24 : f32 to vector<4x8x8xf32>
    %35 = arith.select %33, %34, %21 : vector<4x8x8xi1>, vector<4x8x8xf32>
    %cst_25 = arith.constant dense<0xFF800000> : vector<4x8xf32>
    %36 = vector.multi_reduction <maximumf>, %35, %cst_25 [2] : vector<4x8x8xf32> to vector<4x8xf32>
    %37 = vector.shape_cast %36 : vector<4x8xf32> to vector<4x8x1xf32>
    %38 = vector.broadcast %37 : vector<4x8x1xf32> to vector<4x8x8xf32>
    %39 = arith.subf %35, %38 : vector<4x8x8xf32>
    %40 = math.exp %39 : vector<4x8x8xf32>
    %cst_26 = arith.constant dense<0.000000e+00> : vector<4x8xf32>
    %41 = vector.multi_reduction <add>, %40, %cst_26 [2] : vector<4x8x8xf32> to vector<4x8xf32>
    %42 = vector.shape_cast %41 : vector<4x8xf32> to vector<4x8x1xf32>
    %43 = tpu.reciprocal %42 : vector<4x8x1xf32> -> vector<4x8x1xf32>
    %44 = vector.broadcast %43 : vector<4x8x1xf32> to vector<4x8x8xf32>
    %45 = arith.mulf %40, %44 : vector<4x8x8xf32>
    "tpu.trace_start"() <{level = 10 : i32, message = "hqk,hkd->hqd"}> : () -> ()
    %cst_27 = arith.constant dense<0.000000e+00> : vector<4x8x8xf32>
    %46 = tpu.matmul %45, %20, %cst_27 {dimension_numbers = #tpu.dot_dimension_numbers<[2], [1], [1], [2], [0, 0, 0, 1, 1, 2], [0], [0]>} : vector<4x8x8xf32>, vector<4x8x8xf32>, vector<4x8x8xf32> -> vector<4x8x8xf32>
    "tpu.trace_stop"() : () -> ()
    %c0_28 = arith.constant 0 : index
    %c0_29 = arith.constant 0 : index
    %c0_30 = arith.constant 0 : index
    %47 = vector.load %arg8[%c0_28, %c0_29, %c0_30] : memref<4x8x32xf32, #tpu.memory_space<vmem>>, vector<4x8x32xf32>
    "tpu.trace_start"() <{level = 10 : i32, message = "hqd,hdm->hqm"}> : () -> ()
    %cst_31 = arith.constant dense<0.000000e+00> : vector<4x8x32xf32>
    %48 = tpu.matmul %46, %47, %cst_31 {dimension_numbers = #tpu.dot_dimension_numbers<[2], [1], [1], [2], [0, 0, 0, 1, 1, 2], [0], [0]>} : vector<4x8x8xf32>, vector<4x8x32xf32>, vector<4x8x32xf32> -> vector<4x8x32xf32>
    "tpu.trace_stop"() : () -> ()
    %cst_32 = arith.constant dense<0.000000e+00> : vector<8x32xf32>
    %49 = vector.multi_reduction <add>, %48, %cst_32 [0] : vector<4x8x32xf32> to vector<8x32xf32>
    %c0_33 = arith.constant 0 : index
    %c0_34 = arith.constant 0 : index
    %50 = vector.load %arg9[%c0_33, %c0_34] : memref<1x32xf32, #tpu.memory_space<vmem>>, vector<1x32xf32>
    %51 = vector.broadcast %50 : vector<1x32xf32> to vector<8x32xf32>
    %52 = arith.addf %49, %51 : vector<8x32xf32>
    %c0_35 = arith.constant 0 : index
    %c0_36 = arith.constant 0 : index
    %c0_37 = arith.constant 0 : index
    %53 = vector.load %arg12[%c0_35, %c0_36, %c0_37] : memref<1x8x32xf32, #tpu.memory_space<vmem>>, vector<1x8x32xf32>
    %54 = vector.shape_cast %53 : vector<1x8x32xf32> to vector<8x32xf32>
    %55 = vector.shape_cast %52 : vector<8x32xf32> to vector<1x8x32xf32>
    tpu.vector_store %arg12[%c0_35, %c0_36, %c0_37], %55 {strides = array<i32>} : memref<1x8x32xf32, #tpu.memory_space<vmem>>, vector<1x8x32xf32>,
    return
  }
  func.func @transform_0(%arg0: i32, %arg1: i32) -> (i32, i32, i32) {
    %c0_i32 = arith.constant 0 : i32
    %c0_i32_0 = arith.constant 0 : i32
    return %arg0, %arg1, %c0_i32 : i32, i32, i32
  }
  func.func @transform_1(%arg0: i32, %arg1: i32) -> (i32, i32, i32) {
    %c0_i32 = arith.constant 0 : i32
    %c0_i32_0 = arith.constant 0 : i32
    %c0_i32_1 = arith.constant 0 : i32
    return %arg0, %c0_i32, %c0_i32_0 : i32, i32, i32
  }
  func.func @transform_2(%arg0: i32, %arg1: i32) -> (i32, i32, i32) {
    %c0_i32 = arith.constant 0 : i32
    %c0_i32_0 = arith.constant 0 : i32
    %c0_i32_1 = arith.constant 0 : i32
    return %arg0, %c0_i32, %c0_i32_0 : i32, i32, i32
  }
  func.func @transform_3(%arg0: i32, %arg1: i32) -> (i32, i32, i32) {
    %c0_i32 = arith.constant 0 : i32
    %c0_i32_0 = arith.constant 0 : i32
    %c0_i32_1 = arith.constant 0 : i32
    %c0_i32_2 = arith.constant 0 : i32
    return %c0_i32, %c0_i32_0, %c0_i32_1 : i32, i32, i32
  }
  func.func @transform_4(%arg0: i32, %arg1: i32) -> (i32, i32, i32) {
    %c0_i32 = arith.constant 0 : i32
    %c0_i32_0 = arith.constant 0 : i32
    %c0_i32_1 = arith.constant 0 : i32
    %c0_i32_2 = arith.constant 0 : i32
    return %c0_i32, %c0_i32_0, %c0_i32_1 : i32, i32, i32
  }
  func.func @transform_5(%arg0: i32, %arg1: i32) -> (i32, i32, i32) {
    %c0_i32 = arith.constant 0 : i32
    %c0_i32_0 = arith.constant 0 : i32
    %c0_i32_1 = arith.constant 0 : i32
    %c0_i32_2 = arith.constant 0 : i32
    return %c0_i32, %c0_i32_0, %c0_i32_1 : i32, i32, i32
  }
  func.func @transform_6(%arg0: i32, %arg1: i32) -> (i32, i32, i32) {
    %c0_i32 = arith.constant 0 : i32
    %c0_i32_0 = arith.constant 0 : i32
    %c0_i32_1 = arith.constant 0 : i32
    %c0_i32_2 = arith.constant 0 : i32
    return %c0_i32, %c0_i32_0, %c0_i32_1 : i32, i32, i32
  }
  func.func @transform_7(%arg0: i32, %arg1: i32) -> (i32, i32) {
    %c0_i32 = arith.constant 0 : i32
    %c0_i32_0 = arith.constant 0 : i32
    %c0_i32_1 = arith.constant 0 : i32
    return %c0_i32, %c0_i32_0 : i32, i32
  }
  func.func @transform_8(%arg0: i32, %arg1: i32) -> (i32, i32) {
    %c0_i32 = arith.constant 0 : i32
    %c0_i32_0 = arith.constant 0 : i32
    %c0_i32_1 = arith.constant 0 : i32
    return %c0_i32, %c0_i32_0 : i32, i32
  }
  func.func @transform_9(%arg0: i32, %arg1: i32) -> (i32, i32) {
    %c0_i32 = arith.constant 0 : i32
    %c0_i32_0 = arith.constant 0 : i32
    return %arg1, %c0_i32 : i32, i32
  }
  func.func @transform_10(%arg0: i32, %arg1: i32) -> (i32, i32, i32) {
    %c0_i32 = arith.constant 0 : i32
    %c0_i32_0 = arith.constant 0 : i32
    return %arg0, %arg1, %c0_i32 : i32, i32, i32
  }
}

</mosaic_0001>

<bundles_post_ra>
// kernel: tpu_custom_call.1
= control target key start
LH: loop header
LB: loop body
LE: loop exit
PB: predicated region body
PF: predicated region fallthrough
CT: control target
= control target key end

     0   :  { %s3467_s0 = inlined_call_operand.vmem [shape: f32[2,8,32], index: 0, kind: input, shape index: {}]   ;;  %s3468_s1 = inlined_call_operand.vmem [shape: f32[2,8,32], index: 1, kind: input, shape index: {}]   ;;  %s3469_s2 = inlined_call_operand.vmem [shape: f32[2,8,32], index: 2, kind: input, shape index: {}]   ;;  %s3470_s3 = inlined_call_operand.vmem [shape: f32[4,32,8], index: 3, kind: input, shape index: {}]   ;;  %s3471_s4 = inlined_call_operand.vmem [shape: f32[4,32,8], index: 4, kind: input, shape index: {}]   ;;  %s3472_s5 = inlined_call_operand.vmem [shape: f32[4,32,8], index: 5, kind: input, shape index: {}]   ;;  %s3473_s6 = inlined_call_operand.vmem [shape: f32[4,8,32], index: 6, kind: input, shape index: {}]   ;;  %s3474_s7 = inlined_call_operand.vmem [shape: f32[1,32], index: 7, kind: input, shape index: {}]   ;;  %s3475_s8 = inlined_call_operand.vmem [shape: s32[2,8], index: 8, kind: input, shape index: {}]   ;;  %s3476_s9 = inlined_call_operand.vmem [shape: s32[8,8], index: 9, kind: input, shape index: {}]   ;;  %s3477_s10 = inlined_call_operand.hbm [shape: f32[2,8,32], index: 10, kind: output, shape index: {}]  }
   0x1   :  { %3479 = sst [smem:[#allocation6_spill]] %s3467_s0 }
   0x2   :  { %15 = vsyncpa [#allocation3], 0 }
   0x3   :  { %17 = vsyncpa [#allocation3 + $0x1], 0  ;;  %s3035_s13 = smov 0   ;;  %s3037_s14 = smov 0  }
   0x4   :  { %s3039_s15 = smov 0   ;;  %s3041_s16 = smov 0  }
   0x5   :  { %s3043_s17 = smov 0   ;;  %s3045_s18 = smov 0  }
   0x6 LB: > { %s2429_s19 = sadd.s32 4294967295, %s2973_s18   ;;  %s2430_s20 = sadd.s32 4294967294, %s2973_s18   ;;  %s2973_s18 = sphi %s3045_s18, %s23_s18   ;;  %s2969_s17 = sphi %s3043_s17, %s3491_s17   ;;  %s2965_s16 = sphi %s3041_s16, %s3490_s16   ;;  %s2961_s15 = sphi %s3039_s15, %s3489_s15   ;;  %s2957_s14 = sphi %s3037_s14, %s3488_s14   ;;  %s2953_s13 = sphi %s3035_s13, %s3487_s13  }
   0x7   : > { %s35_s21 = sadd.s32 1, %s2969_s17  ;;  %s276_s22 = sadd.s32 1, %s2961_s15 }
   0x8   : > { %p37_p0 = scmp.ge.s32.totalorder %s35_s21, 2  ;;  %p286_p1 = scmp.ne.s32.totalorder %s2961_s15, %s2957_s14 }
   0x9   : > { %p287_p2 = scmp.eq.s32.totalorder %s2429_s19, 1  ;;  %p292_p3 = scmp.ne.s32.totalorder %s2957_s14, %s2953_s13 }
   0xa   : > { %s3493_s21 = smov (%p37_p0, %s35_s21), 0  ;;  %p293_p5 = scmp.eq.s32.totalorder %s2430_s20, 1 }
   0xb   : > { %3480 = sst [smem:[#allocation5_spill]] %s3493_s21  ;;  %p3075_p4 = por %p287_p2, %p286_p1 }
   0xc   : > { %s271_s24 = ssub.s32 %s2969_s17, %s3493_s21  ;;  %p2434_p6 = scmp.ge.s32.totalorder %s2973_s18, 1 }
   0xd   : > { %p274_p7 = scmp.eq.s32.totalorder %s271_s24, 0  ;;  %p3082_p8 = por %p293_p5, %p292_p3 }
   0xe   : > { %p360_p9 = scmp.lt.s32.totalorder %s2973_s18, 3 }
   0xf   : > { %s3088_s26 = scalar_select %p274_p7, %s2961_s15, %s276_s22  }
  0x10   : > { %p361_p10 = pnand %p2434_p6, %p360_p9 }
  0x11   : > { %v434_v0 = vld [vmem:[%s3470_s3] sm:$0xff] (!%p361_p10)  ;;  %v435_v1 = vld [vmem:[%s3470_s3 + $0x8] sm:$0xff] (!%p361_p10)  ;;  %v2975_v3 = vmov (!%p361_p10), 0.0|0.0   ;;  %v436_v6 = vld [vmem:[%s3470_s3 + $0x10] sm:$0xff] (!%p361_p10)  ;;  %p412_p11 = scmp.lt.s32.totalorder (!%p361_p10), %s2965_s16, 1  ;;  %vm2976_vm0 = vmmov (!%p361_p10), 0   ;;  %s1637_s20 = scalar_lea.vmem (!%p361_p10), %s3475_s8, %s2965_s16 }
  0x12   : > { %364 = sbr.rel (%p361_p10) target bundleno = 1243 (0x4db), region = 60  ;;  %v438_v2 = vld [vmem:[%s3470_s3 + $0x20] sm:$0xff] (!%p361_p10)  ;;  %2748 = vmatprep.subr.bf16.mxu0 (!%p361_p10), %v2975_v3  ;;  %2754 = vmatprep.subr.bf16.mxu1 (!%p361_p10), %v2975_v3  ;;  %v2749_v4 = vpack.c.bf16 (!%p361_p10), %v435_v1, %v434_v0  ;;  %v439_v5 = vld [vmem:[%s3470_s3 + $0x28] sm:$0xff] (!%p361_p10)  ;;  %v437_v7 = vld [vmem:[%s3470_s3 + $0x18] sm:$0xff] (!%p361_p10)  ;;  %v2977_v11 = vmov (!%p361_p10), 0.0   ;;  %s3483_s0 = sld [smem:[#allocation6_spill]] (!%p361_p10) }
  0x13   : > { %v2755_v8 = vpack.c.bf16 (!%p361_p10), %v439_v5, %v438_v2  ;;  %v440_v9 = vld [vmem:[%s3470_s3 + $0x30] sm:$0xff] (!%p361_p10)  ;;  %v441_v10 = vld [vmem:[%s3470_s3 + $0x38] sm:$0xff] (!%p361_p10)  ;;  %2564 = vmatprep.mubr.msk.f32.mxu0 (!%p361_p10), %vm2976_vm0, %v2977_v11  ;;  %2575 = vmatprep.mubr.msk.f32.mxu1 (!%p361_p10), %vm2976_vm0, %v2977_v11  ;;  %v2752_v12 = vpack.c.bf16 (!%p361_p10), %v437_v7, %v436_v6  ;;  %v442_v14 = vld [vmem:[%s3470_s3 + $0x40] sm:$0xff] (!%p361_p10)  ;;  %vm450_vm1 = vcmask (!%p361_p10), 261120   ;;  %vm1332_vm2 = vcmask (!%p361_p10), 64512   ;;  %s409_s12 = sand.u32 (!%p361_p10), 1, %s2957_s14  }
  0x14   : > { %2750 = vmatpush3.bf16.msra.mxu0 (!%p361_p10), %v2749_v4  ;;  %v2758_v13 = vpack.c.bf16 (!%p361_p10), %v441_v10, %v440_v9  ;;  %v443_v15 = vld [vmem:[%s3470_s3 + $0x48] sm:$0xff] (!%p361_p10)  ;;  %v446_v16 = vld [vmem:[%s3470_s3 + $0x60] sm:$0xff] (!%p361_p10)  ;;  %v444_v21 = vld [vmem:[%s3470_s3 + $0x50] sm:$0xff] (!%p361_p10)  ;;  %s2304_s21 = scalar_lea.sflag (!%p361_p10), [#allocation3], %s409_s12 }
  0x15   : > { %2756 = vmatpush3.bf16.msra.mxu1 (!%p361_p10), %v2755_v8  ;;  %2751 = vmatprep.subr.bf16.mxu0 (!%p361_p10), %v2975_v3  ;;  %v447_v17 = vld [vmem:[%s3470_s3 + $0x68] sm:$0xff] (!%p361_p10)  ;;  %v2761_v19 = vpack.c.bf16 (!%p361_p10), %v443_v15, %v442_v14  ;;  %v445_v22 = vld [vmem:[%s3470_s3 + $0x58] sm:$0xff] (!%p361_p10)  ;;  %v448_v23 = vld [vmem:[%s3470_s3 + $0x70] sm:$0xff] (!%p361_p10) }
  0x16   : > { %2757 = vmatprep.subr.bf16.mxu1 (!%p361_p10), %v2975_v3  ;;  %v2767_v20 = vpack.c.bf16 (!%p361_p10), %v447_v17, %v446_v16  ;;  %v449_v24 = vld [vmem:[%s3470_s3 + $0x78] sm:$0xff] (!%p361_p10)  ;;  %v2764_v25 = vpack.c.bf16 (!%p361_p10), %v445_v22, %v444_v21  ;;  %v734_v27 = vld [vmem:[%s3471_s4] sm:$0xff] (!%p361_p10)  ;;  %v735_v28 = vld [vmem:[%s3471_s4 + $0x8] sm:$0xff] (!%p361_p10) }
  0x17   : > { %v2770_v26 = vpack.c.bf16 (!%p361_p10), %v449_v24, %v448_v23  ;;  %v738_v29 = vld [vmem:[%s3471_s4 + $0x20] sm:$0xff] (!%p361_p10)  ;;  %v739_v30 = vld [vmem:[%s3471_s4 + $0x28] sm:$0xff] (!%p361_p10)  ;;  %v2773_v31 = vpack.c.bf16 (!%p361_p10), %v735_v28, %v734_v27  ;;  %v736_v33 = vld [vmem:[%s3471_s4 + $0x10] sm:$0xff] (!%p361_p10) }
  0x18   : > { %2753 = vmatpush3.bf16.msra.mxu0 (!%p361_p10), %v2752_v12  ;;  %v2779_v32 = vpack.c.bf16 (!%p361_p10), %v739_v30, %v738_v29  ;;  %v737_v34 = vld [vmem:[%s3471_s4 + $0x18] sm:$0xff] (!%p361_p10)  ;;  %v740_v35 = vld [vmem:[%s3471_s4 + $0x30] sm:$0xff] (!%p361_p10)  ;;  %v742_v39 = vld [vmem:[%s3471_s4 + $0x40] sm:$0xff] (!%p361_p10) }
  0x19   : > { %s413_s19 = scalar_select %p412_p11, %s2965_s16, 1  ;;  %2759 = vmatpush3.bf16.msra.mxu1 %v2758_v13  ;;  %2760 = vmatprep.subr.bf16.mxu0 %v2975_v3  ;;  %v741_v36 = vld [vmem:[%s3471_s4 + $0x38] sm:$0xff]  ;;  %v2776_v37 = vpack.c.bf16 %v737_v34, %v736_v33  ;;  %v743_v40 = vld [vmem:[%s3471_s4 + $0x48] sm:$0xff]  ;;  %v746_v41 = vld [vmem:[%s3471_s4 + $0x60] sm:$0xff] }
  0x1a   : > { %2766 = vmatprep.subr.bf16.mxu1 %v2975_v3  ;;  %v2782_v38 = vpack.c.bf16 %v741_v36, %v740_v35  ;;  %v747_v42 = vld [vmem:[%s3471_s4 + $0x68] sm:$0xff]  ;;  %v2785_v44 = vpack.c.bf16 %v743_v40, %v742_v39  ;;  %v744_v46 = vld [vmem:[%s3471_s4 + $0x50] sm:$0xff]  ;;  %v745_v47 = vld [vmem:[%s3471_s4 + $0x58] sm:$0xff] }
  0x1b   : > { %s3130_s28 = sshll.u32 %s413_s19, 3  ;;  %v2791_v45 = vpack.c.bf16 %v747_v42, %v746_v41  ;;  %v748_v48 = vld [vmem:[%s3471_s4 + $0x70] sm:$0xff]  ;;  %v749_v49 = vld [vmem:[%s3471_s4 + $0x78] sm:$0xff]  ;;  %v2788_v50 = vpack.c.bf16 %v745_v47, %v744_v46  ;;  %v1033_v52 = vld [vmem:[%s3472_s5] sm:$0xff]  ;;  %v2978_v42 = vmov 0  }
  0x1c   : > { %s418_s22 = scalar_lea.vmem %s3483_s0, %s3130_s28  ;;  %s422_s11 = scalar_lea.vmem %s3468_s1, %s3130_s28  ;;  %v2794_v51 = vpack.c.bf16 %v749_v49, %v748_v48  ;;  %v1034_v53 = vld [vmem:[%s3472_s5 + $0x8] sm:$0xff]  ;;  %v1037_v54 = vld [vmem:[%s3472_s5 + $0x20] sm:$0xff]  ;;  %v1035_v58 = vld [vmem:[%s3472_s5 + $0x10] sm:$0xff] }
  0x1d   : > { %v431_v18 = vld [vmem:[%s418_s22] sm:$0xff]  ;;  %v1038_v55 = vld [vmem:[%s3472_s5 + $0x28] sm:$0xff]  ;;  %v2797_v56 = vpack.c.bf16 %v1034_v53, %v1033_v52  ;;  %v1036_v59 = vld [vmem:[%s3472_s5 + $0x18] sm:$0xff] }
  0x1e   : > { %2565 = vmatmul.mubr.msk.f32.vlgmr.msra.gmra.mrb[0].mxu0 %vm450_vm1, %v431_v18  ;;  %2576 = vmatmul.mubr.msk.f32.vlgmr.msra.gmra.mrb[0].mxu1 %vm450_vm1, %v431_v18  ;;  %v432_v43 = vld [vmem:[%s422_s11] sm:$0xff]  ;;  %v2803_v57 = vpack.c.bf16 %v1038_v55, %v1037_v54  ;;  %v1039_v60 = vld [vmem:[%s3472_s5 + $0x30] sm:$0xff]  ;;  %v2800_v61 = vpack.c.bf16 %v1036_v59, %v1035_v58  ;;  %v1040_v62 = vld [vmem:[%s3472_s5 + $0x38] sm:$0xff]  ;;  %s426_s11 = scalar_lea.vmem %s3469_s2, %s3130_s28  ;;  %s2469_s28 = sshll.u32 %s2965_s16, 7 }
  0x1f   : > { %2762 = vmatpush3.bf16.msra.mxu0 %v2761_v19  ;;  %2768 = vmatpush3.bf16.msra.mxu1 %v2767_v20  ;;  %v2806_v63 = vpack.c.bf16 %v1040_v62, %v1039_v60  ;;  %v1041_v0 = vld [vmem:[%s3472_s5 + $0x40] sm:$0xff]  ;;  %v1042_v1 = vld [vmem:[%s3472_s5 + $0x48] sm:$0xff]  ;;  %v1043_v8 = vld [vmem:[%s3472_s5 + $0x50] sm:$0xff]  ;;  %s3419_s29 = scalar_lea.hbm %s3477_s10, %s2469_s28  ;;  %s2979_s16 = smov [#allocation2]  }
  0x20   : > { %2763 = vmatprep.subr.bf16.mxu0 %v2975_v3  ;;  %2769 = vmatprep.subr.bf16.mxu1 %v2975_v3  ;;  %v1045_v2 = vld [vmem:[%s3472_s5 + $0x60] sm:$0xff]  ;;  %v2809_v5 = vpack.c.bf16 %v1042_v1, %v1041_v0  ;;  %v1046_v6 = vld [vmem:[%s3472_s5 + $0x68] sm:$0xff]  ;;  %v1044_v9 = vld [vmem:[%s3472_s5 + $0x58] sm:$0xff] }
  0x21   : > { %2586 = vmatprep.mubr.msk.f32.mxu0 %vm2976_vm0, %v2977_v11  ;;  %2597 = vmatprep.mubr.msk.f32.mxu1 %vm2976_vm0, %v2977_v11  ;;  %v433_v4 = vld [vmem:[%s426_s11] sm:$0xff]  ;;  %v2815_v7 = vpack.c.bf16 %v1046_v6, %v1045_v2  ;;  %v1047_v10 = vld [vmem:[%s3472_s5 + $0x70] sm:$0xff]  ;;  %v2812_v12 = vpack.c.bf16 %v1044_v9, %v1043_v8  ;;  %v1048_v13 = vld [vmem:[%s3472_s5 + $0x78] sm:$0xff] }
  0x22   : > { %v2818_v14 = vpack.c.bf16 %v1048_v13, %v1047_v10  ;;  %v1638_v39 = vld [vmem:[%s1637_s20] sm:$0x1]  ;;  %s2435_s20 = sshll.u32 %s409_s12, 3 }
  0x23   : > { %2765 = vmatpush3.bf16.msra.mxu0 %v2764_v25  ;;  %2771 = vmatpush3.bf16.msra.mxu1 %v2770_v26  ;;  %vm1639_vm3 = vcmp.ne.s32.totalorder %v1638_v39, 0  ;;  %s411_s19 = scalar_lea.vmem [#allocation2], %s2435_s20  ;;  %s2899_s20 = sshll.u32 %s2979_s16, 4  ;;  %s2900_s20 = int_to_ptr.vmem [resolvable:$false] %s2899_s20 }
  0x24   : > { %2772 = vmatprep.subr.bf16.mxu0 %v2975_v3  ;;  %2778 = vmatprep.subr.bf16.mxu1 %v2975_v3  ;;  %s2318_s24 = sshll.u32 %s411_s19, 4  ;;  %s2901_s22 = scalar_lea.vmem %s2900_s20, 256  ;;  %s3421_s24 = int_to_ptr.vmem [resolvable:$true] %s2318_s24 }
  0x25   : > { %s2895_s30 = scalar_lea.vmem %s3421_s24, 128  ;;  %p2902_p1 = scmp.lt.s32.totalorder %s3421_s24, %s2900_s20 }
  0x26   : > { %2587 = vmatmul.mubr.msk.f32.vlgmr.msra.gmra.mrb[2].mxu0 %vm450_vm1, %v431_v18  ;;  %2598 = vmatmul.mubr.msk.f32.vlgmr.msra.gmra.mrb[2].mxu1 %vm450_vm1, %v431_v18  ;;  %p2896_p12 = scmp.ne.s32.totalorder %s3421_s24, %s2895_s30  ;;  %p2903_p2 = scmp.lt.s32.totalorder %s2901_s22, %s2895_s30 }
  0x27   : > { %2774 = vmatpush3.bf16.msra.mxu0 %v2773_v31  ;;  %2780 = vmatpush3.bf16.msra.mxu1 %v2779_v32 }
  0x28   : > { %2775 = vmatprep.subr.bf16.mxu0 %v2975_v3  ;;  %2781 = vmatprep.subr.bf16.mxu1 %v2975_v3  ;;  %p2897_p13 = pnand %p2896_p12, %p3075_p4  ;;  %p2904_p3 = por %p2903_p2, %p2902_p1 }
  0x29   : > { %2608 = vmatprep.mubr.msk.f32.mxu0 %vm2976_vm0, %v2977_v11  ;;  %2619 = vmatprep.mubr.msk.f32.mxu1 %vm2976_vm0, %v2977_v11 }
  0x2a   : > { %p2898_p0 = pneg %p2897_p13 }
  0x2b   : > { %2777 = vmatpush3.bf16.msra.mxu0 %v2776_v37  ;;  %2783 = vmatpush3.bf16.msra.mxu1 %v2782_v38  ;;  %v1643_v38 = vlaneseq }
  0x2c   : > { %2784 = vmatprep.subr.bf16.mxu0 %v2975_v3  ;;  %2790 = vmatprep.subr.bf16.mxu1 %v2975_v3  ;;  %p2905_p5 = pnand %p2904_p3, %p2898_p0 }
  0x2d   : > { %v1644_v40 = vshrl.u32 %v1643_v38, 7 }
  0x2e   : > { %2609 = vmatmul.mubr.msk.f32.vlgmr.msra.gmra.mrb[4].mxu0 %vm450_vm1, %v432_v43  ;;  %2620 = vmatmul.mubr.msk.f32.vlgmr.msra.gmra.mrb[4].mxu1 %vm450_vm1, %v432_v43 }
  0x2f   : > { %2786 = vmatpush3.bf16.msra.mxu0 %v2785_v44  ;;  %2792 = vmatpush3.bf16.msra.mxu1 %v2791_v45  ;;  %v1645_v41 = vsub.s32 0, %v1644_v40  ;;  %v1640_v45 = vld [vmem:[%s3476_s9] sm:$0xff] }
  0x30   : > { %2787 = vmatprep.subr.bf16.mxu0 %v2975_v3  ;;  %2793 = vmatprep.subr.bf16.mxu1 %v2975_v3  ;;  %vm1641_vm4 = vcmp.ne.s32.totalorder %v1640_v45, 0 }
  0x31   : > { %2630 = vmatprep.mubr.msk.f32.mxu0 %vm2976_vm0, %v2977_v11  ;;  %2641 = vmatprep.mubr.msk.f32.mxu1 %vm2976_vm0, %v2977_v11 }
  0x33   : > { %2789 = vmatpush3.bf16.msra.mxu0 %v2788_v50  ;;  %2795 = vmatpush3.bf16.msra.mxu1 %v2794_v51 }
  0x34   : > { %2796 = vmatprep.subr.bf16.mxu0 %v2975_v3  ;;  %2802 = vmatprep.subr.bf16.mxu1 %v2975_v3 }
  0x36   : > { %2631 = vmatmul.mubr.msk.f32.vlgmr.msra.gmra.mrb[6].mxu0 %vm450_vm1, %v432_v43  ;;  %2642 = vmatmul.mubr.msk.f32.vlgmr.msra.gmra.mrb[6].mxu1 %vm450_vm1, %v432_v43  ;;  %v1642_v43 = vsel %vm1639_vm3, 1, %v2978_v42 }
  0x37   : > { %2798 = vmatpush3.bf16.msra.mxu0 %v2797_v56  ;;  %2804 = vmatpush3.bf16.msra.mxu1 %v2803_v57  ;;  %v1646_v44 = vrot.slane %v1642_v43, %v1645_v41 }
  0x38   : > { %2799 = vmatprep.subr.bf16.mxu0 %v2975_v3  ;;  %2805 = vmatprep.subr.bf16.mxu1 %v2975_v3 }
  0x39   : > { %2652 = vmatprep.mubr.msk.f32.mxu0 %vm2976_vm0, %v2977_v11  ;;  %2663 = vmatprep.mubr.msk.f32.mxu1 %vm2976_vm0, %v2977_v11  ;;  %vm1647_vm5 = vcmp.eq.s32.totalorder %v1646_v44, 1 }
  0x3a   : > { %vm3349_vm6 = vmor %vm1647_vm5, %vm1641_vm4 }
  0x3b   : > { %2801 = vmatpush3.bf16.msra.mxu0 %v2800_v61  ;;  %2807 = vmatpush3.bf16.msra.mxu1 %v2806_v63 }
  0x3c   : > { %2808 = vmatprep.subr.bf16.mxu0 %v2975_v3  ;;  %2814 = vmatprep.subr.bf16.mxu1 %v2975_v3 }
  0x3e   : > { %2653 = vmatmul.mubr.msk.f32.vlgmr.msra.gmra.mrb[8].mxu0 %vm450_vm1, %v433_v4  ;;  %2664 = vmatmul.mubr.msk.f32.vlgmr.msra.gmra.mrb[8].mxu1 %vm450_vm1, %v433_v4 }
  0x3f   : > { %2810 = vmatpush3.bf16.msra.mxu0 %v2809_v5  ;;  %2816 = vmatpush3.bf16.msra.mxu1 %v2815_v7 }
  0x40   : > { %2811 = vmatprep.subr.bf16.mxu0 %v2975_v3  ;;  %2817 = vmatprep.subr.bf16.mxu1 %v2975_v3 }
  0x41   : > { %2674 = vmatprep.mubr.msk.f32.mxu0 %vm2976_vm0, %v2977_v11  ;;  %2685 = vmatprep.mubr.msk.f32.mxu1 %vm2976_vm0, %v2977_v11 }
  0x43   : > { %2813 = vmatpush3.bf16.msra.mxu0 %v2812_v12  ;;  %2819 = vmatpush3.bf16.msra.mxu1 %v2818_v14 }
  0x44   : > { %2688 = vmatprep.subr.mxu0 %v2977_v11  ;;  %2693 = vmatprep.subr.mxu1 %v2977_v11 }
  0x46   : > { %2675 = vmatmul.mubr.msk.f32.vlgmr.msra.gmra.mrb[10].mxu0 %vm450_vm1, %v433_v4  ;;  %2686 = vmatmul.mubr.msk.f32.vlgmr.msra.gmra.mrb[10].mxu1 %vm450_vm1, %v433_v4 }
  0x47   : > { %2690 = vmatprep.mubr.msk.f32.mxu0 %vm2976_vm0, %v2977_v11  ;;  %2695 = vmatprep.mubr.msk.f32.mxu1 %vm2976_vm0, %v2977_v11 }
  0xf1   : > { %v520_v3 = vpop.f32.mrb[0].mxu0  ;;  %v590_v16 = vpop.f32.mrb[0].mxu1 }
  0xf2   : > { %v2566_v15 = vpop.f32.mrb[1].mxu0  ;;  %v2577_v17 = vpop.f32.mrb[1].mxu1 }
  0xf9   : > { %v660_v18 = vpop.f32.mrb[2].mxu0  ;;  %v730_v20 = vpop.f32.mrb[2].mxu1 }
  0xfa   : > { %v2588_v19 = vpop.f32.mrb[3].mxu0  ;;  %v2599_v21 = vpop.f32.mrb[3].mxu1 }
 0x101   : > { %v819_v22 = vpop.f32.mrb[4].mxu0  ;;  %v889_v23 = vpop.f32.mrb[4].mxu1 }
 0x102   : > { %v2610_v24 = vpop.f32.mrb[5].mxu0  ;;  %2689 = vmatpush3.xpose.msk.msra.mxu0 %vm1332_vm2, %v819_v22  ;;  %2694 = vmatpush3.xpose.msk.msra.mxu1 %vm1332_vm2, %v889_v23  ;;  %v2621_v25 = vpop.f32.mrb[5].mxu1 }
 0x103   : > { %2698 = vmatprep.subr.mxu0 %v2977_v11  ;;  %2703 = vmatprep.subr.mxu1 %v2977_v11 }
 0x105   : > { %2691 = vmatmul.mubr.msk.f32.vlgmr.msra.gmra.mrb[12].mxu0 %vm1332_vm2, %v520_v3  ;;  %2696 = vmatmul.mubr.msk.f32.vlgmr.msra.gmra.mrb[12].mxu1 %vm1332_vm2, %v590_v16 }
 0x106   : > { %2700 = vmatprep.mubr.msk.f32.mxu0 %vm2976_vm0, %v2977_v11  ;;  %2705 = vmatprep.mubr.msk.f32.mxu1 %vm2976_vm0, %v2977_v11 }
 0x109   : > { %v959_v26 = vpop.f32.mrb[6].mxu0  ;;  %v1029_v27 = vpop.f32.mrb[6].mxu1 }
 0x10a   : > { %v2632_v28 = vpop.f32.mrb[7].mxu0  ;;  %2699 = vmatpush3.xpose.msk.msra.mxu0 %vm1332_vm2, %v959_v26  ;;  %2704 = vmatpush3.xpose.msk.msra.mxu1 %vm1332_vm2, %v1029_v27  ;;  %v2643_v29 = vpop.f32.mrb[7].mxu1 }
 0x10b   : > { %2708 = vmatprep.subr.mxu0 %v2977_v11  ;;  %2713 = vmatprep.subr.mxu1 %v2977_v11 }
 0x10d   : > { %2701 = vmatmul.mubr.msk.f32.vlgmr.msra.gmra.mrb[14].mxu0 %vm1332_vm2, %v660_v18  ;;  %2706 = vmatmul.mubr.msk.f32.vlgmr.msra.gmra.mrb[14].mxu1 %vm1332_vm2, %v730_v20 }
 0x10e   : > { %2710 = vmatprep.mubr.msk.f32.mxu0 %vm2976_vm0, %v2977_v11  ;;  %2715 = vmatprep.mubr.msk.f32.mxu1 %vm2976_vm0, %v2977_v11 }
 0x111   : > { %v1118_v30 = vpop.f32.mrb[8].mxu0  ;;  %v1188_v32 = vpop.f32.mrb[8].mxu1 }
 0x112   : > { %v2654_v31 = vpop.f32.mrb[9].mxu0  ;;  %2709 = vmatpush3.msra.mxu0 %v1118_v30  ;;  %v2665_v33 = vpop.f32.mrb[9].mxu1  ;;  %2714 = vmatpush3.msra.mxu1 %v1188_v32  ;;  %v1991_v32 = vld [vmem:[%s3473_s6] sm:$0xff] }
 0x113   : > { %2718 = vmatprep.subr.mxu0 %v2977_v11  ;;  %2723 = vmatprep.subr.mxu1 %v2977_v11  ;;  %v1992_v33 = vld [vmem:[%s3473_s6 + $0x8] sm:$0xff] }
 0x119   : > { %v3338_v34 = vpop.f32.mrb[10].mxu0  ;;  %v3340_v35 = vpop.f32.mrb[10].mxu1 }
 0x11a   : > { %v2676_v36 = vpop.f32.mrb[11].mxu0  ;;  %v2687_v37 = vpop.f32.mrb[11].mxu1 }
 0x11b   : > { %v1994_v37 = vld [vmem:[%s3473_s6 + $0x18] sm:$0xff] }
 0x1d8   : > { %v1405_v47 = vpop.f32.mrb[12].mxu0  ;;  %v1481_v49 = vpop.f32.mrb[12].mxu1 }
 0x1d9   : > { %v1651_v48 = vsel %vm3349_vm6, -1e+30, %v1405_v47  ;;  %v2692_v50 = vpop.f32.mrb[13].mxu0  ;;  %v2697_v51 = vpop.f32.mrb[13].mxu1  ;;  %v1652_v53 = vsel %vm3349_vm6, -1e+30, %v1481_v49 }
 0x1da   : > { %v1655_v52 = vsel %vm1332_vm2, %v1651_v48, -inf  ;;  %v1658_v54 = vsel %vm1332_vm2, %v1652_v53, -inf }
 0x1db   : > { %1656 = vmax.xlane.f32.xlu0 %v1655_v52 }
 0x1df   : > { %1659 = vmax.xlane.f32.xlu0 %v1658_v54 }
 0x1e0   : > { %v1557_v55 = vpop.f32.mrb[14].mxu0  ;;  %v1633_v57 = vpop.f32.mrb[14].mxu1 }
 0x1e1   : > { %v1653_v56 = vsel %vm3349_vm6, -1e+30, %v1557_v55  ;;  %v2702_v58 = vpop.f32.mrb[15].mxu0  ;;  %v2707_v59 = vpop.f32.mrb[15].mxu1  ;;  %v1654_v61 = vsel %vm3349_vm6, -1e+30, %v1633_v57 }
 0x1e2   : > { %v1661_v60 = vsel %vm1332_vm2, %v1653_v56, -inf  ;;  %v1664_v62 = vsel %vm1332_vm2, %v1654_v61, -inf }
 0x1e3   : > { %1662 = vmax.xlane.f32.xlu1 %v1661_v60 }
 0x1e7   : > { %1665 = vmax.xlane.f32.xlu1 %v1664_v62 }
 0x268   : > { %v1657_v63 = vpop.xlane.xlu0 %1656 }
 0x269   : > { %v1667_v0 = vsub.f32 %v1651_v48, %v1657_v63 }
 0x26b   : > { %v1671_v1 = vmul.f32 1.442695, %v1667_v0 }
 0x26c   : > { %v1660_v2 = vpop.xlane.xlu0 %1659 }
 0x26d   : > { %2879 = vpow2.f32 %v1671_v1  ;;  %v1668_v4 = vsub.f32 %v1652_v53, %v1660_v2 }
 0x26f   : > { %v1673_v5 = vmul.f32 1.442695, %v1668_v4 }
 0x270   : > { %v1663_v6 = vpop.xlane.xlu1 %1662 }
 0x271   : > { %2881 = vpow2.f32 %v1673_v5  ;;  %v1669_v7 = vsub.f32 %v1653_v56, %v1663_v6  ;;  %v2467_v56 = vld [vmem:[%s3474_s7] ss:$0 sm:$0xff] }
 0x273   : > { %v1675_v8 = vmul.f32 1.442695, %v1669_v7 }
 0x274   : > { %v1666_v9 = vpop.xlane.xlu1 %1665 }
 0x275   : > { %2883 = vpow2.f32 %v1675_v8  ;;  %v1670_v10 = vsub.f32 %v1654_v61, %v1666_v9 }
 0x277   : > { %v2880_v12 = vpop.eup %2879  ;;  %v1677_v13 = vmul.f32 1.442695, %v1670_v10 }
 0x278   : > { %v1679_v14 = vsel %vm1332_vm2, %v2880_v12, 0.0 }
 0x279   : > { %2885 = vpow2.f32 %v1677_v13  ;;  %1680 = vadd.xlane.f32.xlu0 %v1679_v14 }
 0x27b   : > { %v2882_v3 = vpop.eup %2881 }
 0x27c   : > { %v1682_v15 = vsel %vm1332_vm2, %v2882_v3, 0.0 }
 0x27d   : > { %1683 = vadd.xlane.f32.xlu1 %v1682_v15 }
 0x27f   : > { %v2884_v16 = vpop.eup %2883 }
 0x280   : > { %v1685_v17 = vsel %vm1332_vm2, %v2884_v16, 0.0 }
 0x281   : > { %1686 = vadd.xlane.f32.xlu0 %v1685_v17 }
 0x283   : > { %v2886_v18 = vpop.eup %2885 }
 0x284   : > { %v1688_v19 = vsel %vm1332_vm2, %v2886_v18, 0.0 }
 0x285   : > { %1689 = vadd.xlane.f32.xlu1 %v1688_v19 }
 0x306   : > { %v1681_v20 = vpop.xlane.xlu0 %1680 }
 0x307   : > { %2887 = vrcp.f32 %v1681_v20 }
 0x30a   : > { %v1684_v21 = vpop.xlane.xlu1 %1683 }
 0x30b   : > { %2889 = vrcp.f32 %v1684_v21 }
 0x30e   : > { %v1687_v22 = vpop.xlane.xlu0 %1686 }
 0x30f   : > { %2891 = vrcp.f32 %v1687_v22 }
 0x311   : > { %v2888_v23 = vpop.eup %2887 }
 0x312   : > { %v1695_v24 = vmul.f32 %v2888_v23, %v2880_v12  ;;  %v1690_v25 = vpop.xlane.xlu1 %1689 }
 0x313   : > { %2893 = vrcp.f32 %v1690_v25 }
 0x314   : > { %2711 = vmatmul.mubr.msk.f32.vlgmr.msra.gmra.mrb[16].mxu0 %vm1332_vm2, %v1695_v24 }
 0x315   : > { %v2890_v26 = vpop.eup %2889  ;;  %2719 = vmatpush3.msra.mxu0 %v3338_v34  ;;  %2720 = vmatprep.mubr.msk.f32.mxu0 %vm2976_vm0, %v2977_v11  ;;  %v1993_v34 = vld [vmem:[%s3473_s6 + $0x10] sm:$0xff] }
 0x316   : > { %v1696_v27 = vmul.f32 %v2890_v26, %v2882_v3  ;;  %2728 = vmatprep.subr.mxu0 %v2977_v11 }
 0x318   : > { %2716 = vmatmul.mubr.msk.f32.vlgmr.msra.gmra.mrb[16].mxu1 %vm1332_vm2, %v1696_v27 }
 0x319   : > { %v2892_v28 = vpop.eup %2891  ;;  %2724 = vmatpush3.msra.mxu1 %v3340_v35  ;;  %2725 = vmatprep.mubr.msk.f32.mxu1 %vm2976_vm0, %v2977_v11 }
 0x31a   : > { %v1697_v29 = vmul.f32 %v2892_v28, %v2884_v16  ;;  %2733 = vmatprep.subr.mxu1 %v2977_v11 }
 0x31c   : > { %2721 = vmatmul.mubr.msk.f32.vlgmr.msra.gmra.mrb[18].mxu0 %vm1332_vm2, %v1697_v29 }
 0x31d   : > { %v2894_v30 = vpop.eup %2893  ;;  %2730 = vmatprep.mubr.msk.f32.mxu0 %vm2976_vm0, %v2977_v11  ;;  %2729 = vmatpush3.msra.mxu0 %v1991_v32 }
 0x31e   : > { %v1698_v31 = vmul.f32 %v2894_v30, %v2886_v18  ;;  %2738 = vmatprep.subr.mxu0 %v2977_v11 }
 0x320   : > { %2726 = vmatmul.mubr.msk.f32.vlgmr.msra.gmra.mrb[18].mxu1 %vm1332_vm2, %v1698_v31 }
 0x321   : > { %2735 = vmatprep.mubr.msk.f32.mxu1 %vm2976_vm0, %v2977_v11  ;;  %2734 = vmatpush3.msra.mxu1 %v1992_v33 }
 0x322   : > { %2743 = vmatprep.subr.mxu1 %v2977_v11 }
 0x3e7   : > { %v1768_v35 = vpop.f32.mrb[16].mxu0 }
 0x3e8   : > { %v2712_v36 = vpop.f32.mrb[17].mxu0  ;;  %2731 = vmatmul.mubr.msk.f32.vlgmr.msra.gmra.mrb[20].mxu0 %vm1332_vm2, %v1768_v35 }
 0x3e9   : > { %2739 = vmatpush3.msra.mxu0 %v1993_v34  ;;  %2740 = vmatprep.mubr.msk.f32.mxu0 %vm2976_vm0, %v2977_v11 }
 0x3eb   : > { %v1841_v38 = vpop.f32.mrb[16].mxu1 }
 0x3ec   : > { %v2717_v39 = vpop.f32.mrb[17].mxu1  ;;  %2736 = vmatmul.mubr.msk.f32.vlgmr.msra.gmra.mrb[20].mxu1 %vm1332_vm2, %v1841_v38 }
 0x3ed   : > { %2744 = vmatpush3.msra.mxu1 %v1994_v37  ;;  %2745 = vmatprep.mubr.msk.f32.mxu1 %vm2976_vm0, %v2977_v11 }
 0x3ef   : > { %v1914_v40 = vpop.f32.mrb[18].mxu0 }
 0x3f0   : > { %v2722_v41 = vpop.f32.mrb[19].mxu0  ;;  %2741 = vmatmul.mubr.msk.f32.vlgmr.msra.gmra.mrb[22].mxu0 %vm1332_vm2, %v1914_v40 }
 0x3f3   : > { %v1987_v42 = vpop.f32.mrb[18].mxu1 }
 0x3f4   : > { %v2727_v43 = vpop.f32.mrb[19].mxu1  ;;  %2746 = vmatmul.mubr.msk.f32.vlgmr.msra.gmra.mrb[22].mxu1 %vm1332_vm2, %v1987_v42 }
 0x4bb   : > { %v2064_v44 = vpop.f32.mrb[20].mxu0 }
 0x4bc   : > { %v2732_v45 = vpop.f32.mrb[21].mxu0  ;;  %v2287_v47 = vsel %vm450_vm1, %v2064_v44, 0.0 }
 0x4bf   : > { %v2137_v46 = vpop.f32.mrb[20].mxu1 }
 0x4c0   : > { %v2288_v48 = vsel %vm450_vm1, %v2137_v46, 0.0  ;;  %v2737_v49 = vpop.f32.mrb[21].mxu1 }
 0x4c1   : > { %v2289_v50 = vadd.f32 %v2288_v48, %v2287_v47 }
 0x4c3   : > { %v2210_v11 = vpop.f32.mrb[22].mxu0 }
 0x4c4   : > { %v2290_v51 = vsel %vm450_vm1, %v2210_v11, 0.0  ;;  %v2742_v52 = vpop.f32.mrb[23].mxu0 }
 0x4c5   : > { %v2291_v53 = vadd.f32 %v2290_v51, %v2289_v50 }
 0x4c7   : > { %v2283_v54 = vpop.f32.mrb[22].mxu1 }
 0x4c8   : > { %v2292_v55 = vsel %vm450_vm1, %v2283_v54, 0.0  ;;  %v2747_v57 = vpop.f32.mrb[23].mxu1 }
 0x4c9   : > { %v2293_v58 = vadd.f32 %v2292_v55, %v2291_v53 }
 0x4cb   : > { %v2301_v59 = vadd.f32 %v2467_v56, %v2293_v58 }
 0x4cd   : > { %2302 = vst.msk [vmem:[%s411_s19] sm:$0xff] %vm450_vm1, %v2301_v59 }
 0x4ce   : > { %2908 = shalt.err (!%p2905_p5)
}
 0x4cf   : > { %s2909_s12 = scalar_lea.hbm %s3419_s29, 128  ;;  %s2913_s19 = scalar_lea.hbm %s3477_s10, 256 }
 0x4d0   : > { %p2910_p6 = scmp.ne.s32.totalorder %s3419_s29, %s2909_s12  ;;  %p2914_p10 = scmp.lt.u32.totalorder %s3419_s29, %s3477_s10 }
 0x4d1   : > { %p2915_p11 = scmp.lt.u32.totalorder %s2913_s19, %s2909_s12  ;;  %p2917_p13 = scmp.lt.u32.totalorder %s2909_s12, %s3419_s29 }
 0x4d2   : > { %p2911_p7 = pnand %p2910_p6, %p3075_p4 }
 0x4d3   : > { %p2916_p12 = por %p2915_p11, %p2914_p10 }
 0x4d4   : > { %p2912_p9 = pneg %p2911_p7 }
 0x4d5   : > { %p2918_p0 = por %p2917_p13, %p2916_p12 }
 0x4d7   : > { %p2919_p1 = pnand %p2918_p0, %p2912_p9 }
 0x4d9   : > { %2922 = shalt.err (!%p2919_p1)
}
 0x4da   : > { %2820 = dma.vmem_to_hbm [thread:$0]  (%p3075_p4), %s3421_s24, 128, %s3419_s29, %s2304_s21  }
 0x4db PF: > { %p2826_p2 = scmp.ge.s32.totalorder %s2973_s18, 2  ;;  %s2330_s30 = sand.u32 1, %s2953_s13  }
 0x4dc   : > { %s2331_s16 = scalar_lea.sflag [#allocation3], %s2330_s30 }
 0x4dd   : > { %p2823_p3 = pnand %p2826_p2, %p3082_p8 }
 0x4df   : > { %2948 = dma.done.wait (!%p2823_p3), %s2331_s16, 128  }
 0x4e0   : > { %2950 = vsyncadd (!%p2823_p3), %s2331_s16, 4294967168  ;;  %s23_s18 = sadd.s32 1, %s2973_s18   ;;  %s3486_s23 = sld [smem:[#allocation5_spill]] }
 0x4e1   : > { %p20_p5 = scmp.ge.s32.totalorder %s23_s18, 4   ;;  %s3487_s13 = smov %s2957_s14 }
 0x4e2   : > { %s3488_s14 = smov %s2961_s15  ;;  %s3489_s15 = smov %s3088_s26 }
 0x4e3   : > { %s3490_s16 = smov %s2969_s17  ;;  %22 = sbr.rel (!%p20_p5) target bundleno = 6 (0x6), region = 105 }
 0x4e6   : > { %s3491_s17 = smov %s3486_s23 }
 0x4ea   :  { %2336 = vsyncpa [#allocation3], 1 }
 0x4eb   :  { %2338 = vsyncpa [#allocation3 + $0x1], 1 }

</bundles_post_ra>
